<compile_context>
chip_gen: v6e
topology: v6e:2x2x1
jax: 0.10.0
libtpu: 0.0.40
codegen_flags: <defaults>
</compile_context>

<pallas_src>
import jax
import jax.numpy as jnp
from jax.experimental import pallas as pl
from jax.experimental.pallas import tpu as pltpu


_MAX_TILE_HW = 16384  # lane cap; the VMEM budget below is the real limiter.


def _round_up(x, m):
    return ((x + m - 1) // m) * m


def _vmem_capacity_bytes():
    # Generation-aware VMEM: 128 MiB on v5e/v6e, 64 MiB per TensorCore on v7x.
    try:
        return int(pltpu.get_tpu_info().vmem_capacity_bytes)
    except Exception:
        return 64 * 1024 * 1024  # conservative fallback (v7x is the smallest)


def _workset_bytes(b_blk, tile_hw, c, cout, in_itemsize, out_itemsize):
    """Per-step VMEM working set: double-buffered x / out / K tiles plus the
    f32 dot temporary when the output dtype is narrower than f32."""
    x_t = b_blk * c * tile_hw * in_itemsize
    o_t = b_blk * cout * tile_hw * out_itemsize
    k_t = b_blk * cout * c * in_itemsize
    acc = b_blk * cout * tile_hw * 4 if out_itemsize < 4 else 0
    return 2 * (x_t + o_t + k_t) + acc


def _select_tiling(n, c, cout, hw, in_itemsize, out_itemsize, tile_hw):
    """Pick (batch_block, tile_hw, vmem_limit_bytes)."""
    vmem_cap = _vmem_capacity_bytes()
    budget = vmem_cap // 2  # leave half of physical VMEM as headroom
    hw_pad128 = _round_up(hw, 128)

    acc_extra = 4 if out_itemsize < 4 else 0
    per_lane = 2 * (c * in_itemsize + cout * out_itemsize) + cout * acc_extra
    k_bytes = 2 * cout * c * in_itemsize
    max_lanes = max(128, ((budget - k_bytes) // per_lane) // 128 * 128)

    b_blk = 1
    if tile_hw is not None:
        # Validate / clamp a caller-supplied tile against the VMEM budget.
        assert tile_hw % 128 == 0, "tile_hw must be a multiple of 128"
        tile_hw = max(128, min(tile_hw, hw_pad128, max_lanes))
    else:
        tile_hw = min(_MAX_TILE_HW, max_lanes, hw_pad128)
        if n == 1 and hw_pad128 > 128:
            # Keep >= 2 hw tiles so both v7x TensorCores get parallel work
            # (harmless no-op on single-TC v5e/v6e).
            tile_hw = min(tile_hw, _round_up(pl.cdiv(hw_pad128, 2), 128))
        if tile_hw >= hw_pad128 and n > 1:
            # Small-hw / large-n regime: block several batches per grid step to
            # amortize the per-step pipeline overhead, while keeping >= 2 grid
            # steps so megacore sharding still has parallel work.
            per_batch = max(
                1, _workset_bytes(1, tile_hw, c, cout, in_itemsize, out_itemsize))
            b_blk = max(1, min(n, budget // per_batch))
            b_blk = min(b_blk, max(1, pl.cdiv(n, 2)))

    workset = _workset_bytes(b_blk, tile_hw, c, cout, in_itemsize, out_itemsize)
    vmem_limit = min(int(vmem_cap * 0.9), max(workset + (8 << 20), 32 << 20))
    return b_blk, tile_hw, vmem_limit


def _pwdp_kernel(x_ref, k_ref, o_ref):
    # x_ref: (c, tile_hw), k_ref: (cout, c), o_ref: (cout, tile_hw)
    o_ref[...] = jnp.dot(
        k_ref[...], x_ref[...], preferred_element_type=jnp.float32
    ).astype(o_ref.dtype)


def _pwdp_kernel_batched(x_ref, k_ref, o_ref):
    # x_ref: (B, c, tile_hw), k_ref: (B, cout, c), o_ref: (B, cout, tile_hw)
    # B is small and static -> unrolled per-batch MXU matmuls.
    for b in range(x_ref.shape[0]):
        o_ref[b] = jnp.dot(
            k_ref[b], x_ref[b], preferred_element_type=jnp.float32
        ).astype(o_ref.dtype)


def pixel_wise_dot_product(x, K, *, tile_hw=None, compute_dtype=None,
                           out_dtype=None, vmem_limit_bytes=None,
                           x_buffer_count=None):
    """x: (n, c, h, w), K: (n, cout, c) -> (n, cout, h, w).

    compute_dtype: optionally cast x/K (e.g. jnp.bfloat16) before the kernel to
      halve HBM traffic; accumulation is always f32. Default keeps the caller's
      dtype so numerics match the PyTorch reference exactly.
    x_buffer_count: optional pipeline depth for the x input (sweep knob,
      e.g. 3 on v7x); default uses Pallas' standard double buffering.
    """
    n, c, h, w = x.shape
    kn, cout, ck = K.shape
    assert c == ck, (
        "Number of channels in x and Embedding dimension (at dim 2) of K "
        "matrix must match"
    )
    assert kn == n, "Batch dims of x and K must match"

    if out_dtype is None:
        out_dtype = x.dtype
    if compute_dtype is not None:
        x = x.astype(compute_dtype)
        K = K.astype(compute_dtype)

    hw = h * w
    in_itemsize = jnp.dtype(x.dtype).itemsize
    out_itemsize = jnp.dtype(out_dtype).itemsize

    b_blk, tile_hw, auto_vmem_limit = _select_tiling(
        n, c, cout, hw, in_itemsize, out_itemsize, tile_hw)
    if vmem_limit_bytes is None:
        vmem_limit_bytes = auto_vmem_limit

    num_b_blocks = pl.cdiv(n, b_blk)
    num_hw_tiles = pl.cdiv(hw, tile_hw)

    # Free reshape (contiguous split of the trailing dims). No pad / slice HBM
    # passes: ragged last hw / batch blocks are partial Pallas blocks whose
    # out-of-bounds lanes are masked on the output store.
    x_flat = x.reshape(n, c, hw)

    x_pipeline = {} if x_buffer_count is None else {
        "pipeline_mode": pl.Buffered(x_buffer_count)}

    if b_blk == 1:
        kernel = _pwdp_kernel
        in_specs = [
            pl.BlockSpec((pl.Squeezed(), c, tile_hw), lambda b, j: (b, 0, j),
                         **x_pipeline),
            pl.BlockSpec((pl.Squeezed(), cout, c), lambda b, j: (b, 0, 0)),
        ]
        out_specs = pl.BlockSpec((pl.Squeezed(), cout, tile_hw),
                                 lambda b, j: (b, 0, j))
    else:
        kernel = _pwdp_kernel_batched
        in_specs = [
            pl.BlockSpec((b_blk, c, tile_hw), lambda b, j: (b, 0, j),
                         **x_pipeline),
            pl.BlockSpec((b_blk, cout, c), lambda b, j: (b, 0, 0)),
        ]
        out_specs = pl.BlockSpec((b_blk, cout, tile_hw), lambda b, j: (b, 0, j))

    flops = 2 * n * cout * c * hw
    bytes_accessed = (in_itemsize * (n * c * hw + n * cout * c)
                      + out_itemsize * n * cout * hw)

    out_flat = pl.pallas_call(
        kernel,
        out_shape=jax.ShapeDtypeStruct((n, cout, hw), out_dtype),
        grid_spec=pltpu.PrefetchScalarGridSpec(
            num_scalar_prefetch=0,
            # (batch-block, hw-tile): K's block index is constant over the
            # inner axis, so it stays resident across all hw tiles of a batch.
            grid=(num_b_blocks, num_hw_tiles),
            in_specs=in_specs,
            out_specs=out_specs,
        ),
        compiler_params=pltpu.CompilerParams(
            dimension_semantics=("parallel", "parallel"),
            vmem_limit_bytes=vmem_limit_bytes,
        ),
        cost_estimate=pl.CostEstimate(
            flops=flops, transcendentals=0, bytes_accessed=bytes_accessed
        ),
    )(x_flat, K)

    return out_flat.reshape(n, cout, h, w)


if __name__ == "__main__":
    key = jax.random.PRNGKey(0)
    kx, kk, kx2, kx3, kk3 = jax.random.split(key, 5)

    # 1) Standard small case: n=2, c=4, hw=256 -> single-batch kernel, grid (2, 1).
    n, c, h, w, cout = 2, 4, 16, 16, 8
    x = jax.random.normal(kx, (n, c, h, w), dtype=jnp.float32)
    K = jax.random.normal(kk, (n, cout, c), dtype=jnp.float32)
    out = pixel_wise_dot_product(x, K)
    jax.block_until_ready(out)
    ref = jnp.einsum("nchw,noc->nohw", x, K)
    assert out.shape == (n, cout, h, w)
    assert jnp.allclose(out, ref, atol=1e-5, rtol=1e-5)

    # 2) Non-128-aligned hw with an explicit small tile -> ragged last hw tile
    #    handled in-kernel (no wrapper pad/slice), grid (2, 2).
    h2, w2 = 12, 11  # hw = 132
    x2 = jax.random.normal(kx2, (n, c, h2, w2), dtype=jnp.float32)
    out2 = pixel_wise_dot_product(x2, K, tile_hw=128)
    jax.block_until_ready(out2)
    ref2 = jnp.einsum("nchw,noc->nohw", x2, K)
    assert jnp.allclose(out2, ref2, atol=1e-5, rtol=1e-5)

    # 3) Small-hw / larger-n regime -> batched kernel (3 batches per grid step)
    #    with ragged last batch block and ragged hw block.
    n3, h3, w3 = 5, 8, 8  # hw = 64
    x3 = jax.random.normal(kx3, (n3, c, h3, w3), dtype=jnp.float32)
    K3 = jax.random.normal(kk3, (n3, cout, c), dtype=jnp.float32)
    out3 = pixel_wise_dot_product(x3, K3)
    jax.block_until_ready(out3)
    ref3 = jnp.einsum("nchw,noc->nohw", x3, K3)
    assert jnp.allclose(out3, ref3, atol=1e-5, rtol=1e-5)

    # 4) Optional bf16 compute path (halved HBM traffic, f32 accumulation).
    out4 = pixel_wise_dot_product(x, K, compute_dtype=jnp.bfloat16)
    jax.block_until_ready(out4)
    assert float(jnp.max(jnp.abs(out4 - ref))) < 0.5

    print("KERNEL_OK")
</pallas_src>

<mosaic_0001>
module attributes {stable_mosaic.version = 11 : i64} {
  func.func @_pwdp_kernel(%arg0: i32, %arg1: i32, %arg2: memref<1x4x256xf32, #tpu.memory_space<vmem>>, %arg3: memref<1x8x4xf32, #tpu.memory_space<vmem>>, %arg4: memref<1x8x256xf32, #tpu.memory_space<vmem>>) attributes {dimension_semantics = [#tpu.dimension_semantics<parallel>, #tpu.dimension_semantics<parallel>], iteration_bounds = array<i64: 2, 1>, scalar_prefetch = 0 : i64, scratch_operands = 0 : i64, tpu.core_type = #tpu.core_type<tc>, window_params = [{transform_indices = @transform_0, window_bounds = array<i64: 1, 4, 256>}, {transform_indices = @transform_1, window_bounds = array<i64: 1, 8, 4>}, {transform_indices = @transform_2, window_bounds = array<i64: 1, 8, 256>}]} {
    %c0 = arith.constant 0 : index
    %c0_0 = arith.constant 0 : index
    %c0_1 = arith.constant 0 : index
    %0 = vector.load %arg3[%c0, %c0_0, %c0_1] : memref<1x8x4xf32, #tpu.memory_space<vmem>>, vector<1x8x4xf32>
    %1 = vector.shape_cast %0 : vector<1x8x4xf32> to vector<8x4xf32>
    %c0_2 = arith.constant 0 : index
    %c0_3 = arith.constant 0 : index
    %c0_4 = arith.constant 0 : index
    %2 = vector.load %arg2[%c0_2, %c0_3, %c0_4] : memref<1x4x256xf32, #tpu.memory_space<vmem>>, vector<1x4x256xf32>
    %3 = vector.shape_cast %2 : vector<1x4x256xf32> to vector<4x256xf32>
    %cst = arith.constant dense<0.000000e+00> : vector<8x256xf32>
    %4 = tpu.matmul %1, %3, %cst {dimension_numbers = #tpu.dot_dimension_numbers<[1], [0], [0], [1], [0, 0, 1, 1], [], []>} : vector<8x4xf32>, vector<4x256xf32>, vector<8x256xf32> -> vector<8x256xf32>
    %c0_5 = arith.constant 0 : index
    %c0_6 = arith.constant 0 : index
    %c0_7 = arith.constant 0 : index
    %5 = vector.load %arg4[%c0_5, %c0_6, %c0_7] : memref<1x8x256xf32, #tpu.memory_space<vmem>>, vector<1x8x256xf32>
    %6 = vector.shape_cast %5 : vector<1x8x256xf32> to vector<8x256xf32>
    %7 = vector.shape_cast %4 : vector<8x256xf32> to vector<1x8x256xf32>
    tpu.vector_store %arg4[%c0_5, %c0_6, %c0_7], %7 {strides = array<i32>} : memref<1x8x256xf32, #tpu.memory_space<vmem>>, vector<1x8x256xf32>,
    return
  }
  func.func @transform_0(%arg0: i32, %arg1: i32) -> (i32, i32, i32) {
    %c0_i32 = arith.constant 0 : i32
    %c0_i32_0 = arith.constant 0 : i32
    return %arg0, %c0_i32, %arg1 : i32, i32, i32
  }
  func.func @transform_1(%arg0: i32, %arg1: i32) -> (i32, i32, i32) {
    %c0_i32 = arith.constant 0 : i32
    %c0_i32_0 = arith.constant 0 : i32
    %c0_i32_1 = arith.constant 0 : i32
    return %arg0, %c0_i32, %c0_i32_0 : i32, i32, i32
  }
  func.func @transform_2(%arg0: i32, %arg1: i32) -> (i32, i32, i32) {
    %c0_i32 = arith.constant 0 : i32
    %c0_i32_0 = arith.constant 0 : i32
    return %arg0, %c0_i32, %arg1 : i32, i32, i32
  }
}

</mosaic_0001>

<bundles_post_ra>
// kernel: tpu_custom_call.1
= control target key start
LH: loop header
LB: loop body
LE: loop exit
PB: predicated region body
PF: predicated region fallthrough
CT: control target
= control target key end

     0   :  { %7 = vsyncpa [#allocation3], 0  ;;  %s660_s0 = inlined_call_operand.vmem [shape: f32[2,4,256], index: 0, kind: input, shape index: {}]   ;;  %s661_s1 = inlined_call_operand.vmem [shape: f32[2,8,4], index: 1, kind: input, shape index: {}]   ;;  %s662_s2 = inlined_call_operand.hbm [shape: f32[2,8,256], index: 2, kind: output, shape index: {}]  }
   0x1   :  { %9 = vsyncpa [#allocation3 + $0x1], 0  ;;  %s552_s9 = smov 0   ;;  %s554_s10 = smov 0  }
   0x2   :  { %s556_s11 = smov 0   ;;  %s558_s12 = smov 0  }
   0x3   :  { %s560_s13 = smov 0   ;;  %s562_s14 = smov 0  }
   0x4 LB: > { %s381_s15 = sadd.s32 4294967295, %s533_s14   ;;  %s382_s16 = sadd.s32 4294967294, %s533_s14   ;;  %s533_s14 = sphi %s562_s14, %s15_s14   ;;  %s529_s13 = sphi %s560_s13, %s669_s13   ;;  %s525_s12 = sphi %s558_s12, %s668_s12   ;;  %s521_s11 = sphi %s556_s11, %s667_s11   ;;  %s517_s10 = sphi %s554_s10, %s666_s10   ;;  %s513_s9 = sphi %s552_s9, %s665_s9  }
   0x5   : > { %s27_s17 = sadd.s32 1, %s529_s13  ;;  %s90_s18 = sadd.s32 1, %s521_s11 }
   0x6   : > { %p29_p0 = scmp.ge.s32.totalorder %s27_s17, 2  ;;  %p100_p1 = scmp.ne.s32.totalorder %s521_s11, %s517_s10 }
   0x7   : > { %p101_p2 = scmp.eq.s32.totalorder %s381_s15, 1  ;;  %p106_p3 = scmp.ne.s32.totalorder %s517_s10, %s513_s9 }
   0x8   : > { %s671_s17 = smov (%p29_p0, %s27_s17), 0  ;;  %p107_p5 = scmp.eq.s32.totalorder %s382_s16, 1 }
   0x9   : > { %p592_p4 = por %p101_p2, %p100_p1  ;;  %s85_s20 = ssub.s32 %s529_s13, %s671_s17 }
   0xa   : > { %p385_p6 = scmp.ge.s32.totalorder %s533_s14, 1  ;;  %p88_p7 = scmp.eq.s32.totalorder %s85_s20, 0 }
   0xb   : > { %p599_p8 = por %p107_p5, %p106_p3  ;;  %p145_p9 = scmp.lt.s32.totalorder %s533_s14, 3 }
   0xc   : > { %s605_s22 = scalar_select %p88_p7, %s521_s11, %s90_s18  }
   0xd   : > { %p146_p10 = pnand %p385_p6, %p145_p9 }
   0xe   : > { %p176_p11 = scmp.lt.s32.totalorder (!%p146_p10), %s525_s12, 1  ;;  %s172_s3 = sand.u32 (!%p146_p10), 1, %s517_s10  }
   0xf   : > { %149 = sbr.rel (%p146_p10) target bundleno = 237 (0xed), region = 28  ;;  %s386_s4 = sshll.u32 (!%p146_p10), %s172_s3, 4 }
  0x10   : > { %s174_s5 = scalar_lea.vmem (!%p146_p10), [#allocation2], %s386_s4  ;;  %s399_s7 = sshll.u32 (!%p146_p10), %s525_s12, 8 }
  0x11   : > { %s293_s6 = sshll.u32 (!%p146_p10), %s174_s5, 4  ;;  %s291_s16 = scalar_lea.hbm (!%p146_p10), %s662_s2, %s399_s7  ;;  %s617_s6 = int_to_ptr.vmem [resolvable:$true] %s293_s6 }
  0x12   : > { %s277_s18 = scalar_lea.sflag (!%p146_p10), [#allocation3], %s172_s3  ;;  %s457_s20 = scalar_lea.vmem (!%p146_p10), %s617_s6, 256 }
  0x13   : > { %p458_p12 = scmp.ne.s32.totalorder (!%p146_p10), %s617_s6, %s457_s20 }
  0x14   : > { %v535_v0 = vmov 0.0   ;;  %s177_s23 = scalar_select %p176_p11, %s525_s12, 1  ;;  %vm198_vm0 = vcmask 1043456   ;;  %vm194_vm1 = vcmask 31744  }
  0x15   : > { %267 = vmatprep.mubr.f32.mxu0 %v535_v0  ;;  %p459_p13 = pnand %p458_p12, %p592_p4  ;;  %s536_s12 = smov [#allocation2]  }
  0x16   : > { %s398_s24 = sshll.u32 %s177_s23, 3  ;;  %s461_s23 = sshll.u32 %s536_s12, 4  ;;  %s462_s23 = int_to_ptr.vmem [resolvable:$false] %s461_s23 }
  0x17   : > { %s183_s27 = scalar_lea.vmem %s660_s0, %s398_s24  ;;  %s188_s30 = scalar_lea.vmem %s661_s1, %s398_s24 }
  0x18   : > { %v191_v1 = vld [vmem:[%s183_s27] sm:$0xff]  ;;  %p460_p0 = pneg %p459_p13  ;;  %s463_s24 = scalar_lea.vmem %s462_s23, 512 }
  0x19   : > { %v193_v2 = vcombine.high %v191_v1, %v191_v1  ;;  %v190_v3 = vld [vmem:[%s188_s30] sm:$0xff]  ;;  %p464_p1 = scmp.lt.s32.totalorder %s617_s6, %s462_s23  ;;  %p465_p2 = scmp.lt.s32.totalorder %s463_s24, %s457_s20 }
  0x1b   : > { %390 = vmatprep.subr.msk.mxu0 %vm198_vm0, %v193_v2  ;;  %p466_p3 = por %p465_p2, %p464_p1 }
  0x1c   : > { %391 = vmatpush1.msk.msra.mxu0 %vm198_vm0, %v191_v1 }
  0x1d   : > { %392 = vmatmul.mubr.msk.f32.vlgmr.msra.gmra.mxu0 %vm194_vm1, %v190_v3  ;;  %p467_p5 = pnand %p466_p3, %p460_p0 }
  0xdd   : > { %v269_v4 = vpop.f32.mrf.mxu0 }
  0xde   : > { %274 = vst [vmem:[%s174_s5] sm:$0xff] %v269_v4 }
  0xdf   : > { %v271_v5 = vpop.f32.mrf.mxu0 }
  0xe0   : > { %275 = vst [vmem:[%s174_s5 + $0x8] sm:$0xff] %v271_v5 }
  0xe1   : > { %470 = shalt.err (!%p467_p5)
}
  0xe2   : > { %s471_s25 = scalar_lea.hbm %s291_s16, 256  ;;  %s475_s28 = scalar_lea.hbm %s662_s2, 512 }
  0xe3   : > { %p472_p6 = scmp.ne.s32.totalorder %s291_s16, %s471_s25  ;;  %p476_p10 = scmp.lt.s32.totalorder %s291_s16, %s662_s2 }
  0xe4   : > { %p477_p11 = scmp.lt.s32.totalorder %s475_s28, %s471_s25 }
  0xe5   : > { %p473_p7 = pnand %p472_p6, %p592_p4 }
  0xe6   : > { %p478_p12 = por %p477_p11, %p476_p10 }
  0xe7   : > { %p474_p9 = pneg %p473_p7 }
  0xe9   : > { %p479_p13 = pnand %p478_p12, %p474_p9 }
  0xeb   : > { %482 = shalt.err (!%p479_p13)
}
  0xec   : > { %400 = dma.vmem_to_hbm [thread:$0]  (%p592_p4), %s617_s6, 256, %s291_s16, %s277_s18  }
  0xed PF: > { %p406_p0 = scmp.ge.s32.totalorder %s533_s14, 2  ;;  %s305_s3 = sand.u32 1, %s513_s9  }
  0xee   : > { %s306_s4 = scalar_lea.sflag [#allocation3], %s305_s3 }
  0xef   : > { %p403_p1 = pnand %p406_p0, %p599_p8 }
  0xf1   : > { %p404_p2 = pneg %p403_p1 }
  0xf3   : > { %508 = dma.done.wait (%p404_p2), %s306_s4, 256  }
  0xf4   : > { %510 = vsyncadd (%p404_p2), %s306_s4, 4294967040  ;;  %s15_s14 = sadd.s32 1, %s533_s14   ;;  %s665_s9 = smov %s517_s10 }
  0xf5   : > { %p12_p3 = scmp.ge.s32.totalorder %s15_s14, 4   ;;  %s666_s10 = smov %s521_s11 }
  0xf6   : > { %s667_s11 = smov %s605_s22  ;;  %s668_s12 = smov %s529_s13 }
  0xf7   : > { %s669_s13 = smov %s671_s17  ;;  %14 = sbr.rel (!%p12_p3) target bundleno = 4 (0x4), region = 66 }
  0xfc   :  { %311 = vsyncpa [#allocation3], 1 }
  0xfd   :  { %313 = vsyncpa [#allocation3 + $0x1], 1 }

</bundles_post_ra>
